<compile_context>
chip_gen: v7x
topology: tpu7x:2x2x1
jax: 0.10.0
libtpu: 0.0.40
codegen_flags: <defaults>
</compile_context>

<pallas_src>
import functools

import jax
import jax.numpy as jnp
import numpy as np
from jax.experimental import pallas as pl
from jax.experimental.pallas import tpu as pltpu


# ----------------------------- Hyperparameters -----------------------------
class HParams:
    conv_sub_1_nodes = 8
    conv_sub_1_kernel = 3
    conv_sub_1_stride = (2, 2)
    conv_sub_2_kernel = 3
    conv_sub_2_stride = (2, 2)
    input_rows = 16
    input_cols = 16


def _ceil_to(x, n):
    return ((x + n - 1) // n) * n


# ----------------------------- Pallas kernel -------------------------------
def _convsub_matmul_kernel(p_ref, w_ref, b_ref, o_ref):
    # p_ref: (tm, K_pad)   bf16 im2col patches of the composed 7x7/stride-4 conv
    # w_ref: (K_pad, 128)  bf16 composed weight matrix (rows (kh,kw,ci), lanes zero-padded)
    # b_ref: (1, 128)      f32  composed bias row (lanes zero-padded)
    # o_ref: (tm, 128)     f32  lane-dense output rows m = b*9 + oh2*3 + ow2
    o_ref[...] = jnp.dot(p_ref[...], w_ref[...],
                         preferred_element_type=jnp.float32) + b_ref[...]


# --------------------------- Module equivalent ------------------------------
class ConvSubSamplingPallas:
    """Pallas/TPU equivalent of the PyTorch ConvSubSampling module (NCHW in / NCHW out)."""

    def __init__(self, hp, in_size, out_nodes, key):
        self.hp = hp
        ka, kb, kc, kd = jax.random.split(key, 4)
        k1, k2 = hp.conv_sub_1_kernel, hp.conv_sub_2_kernel
        s1 = tuple(hp.conv_sub_1_stride)
        s2 = tuple(hp.conv_sub_2_stride)
        # Kernel below is specialized to this configuration (composition math assumes it).
        assert k1 == 3 and k2 == 3 and s1 == (2, 2) and s2 == (2, 2)
        assert hp.input_rows == 16 and hp.input_cols == 16
        assert out_nodes <= 128 and hp.conv_sub_1_nodes <= 128

        co1 = hp.conv_sub_1_nodes
        # Deterministic synthetic parameters (PyTorch Conv2d layout OIHW); f32 copies kept
        # for the reference path.
        self.w1 = 0.1 * jax.random.normal(ka, (co1, in_size, k1, k1), jnp.float32)
        self.b1 = 0.1 * jax.random.normal(kb, (co1,), jnp.float32)
        self.w2 = 0.1 * jax.random.normal(kc, (out_nodes, co1, k2, k2), jnp.float32)
        self.b2 = 0.1 * jax.random.normal(kd, (out_nodes,), jnp.float32)
        self.out_nodes = out_nodes

        # ---- Compose conv2(conv1(x)) into one 7x7 / stride-4 conv (no inter-conv
        # activation in the module, so this is exact in f32).
        self._k_eff = (k2 - 1) * s1[0] + k1          # 7
        self._s_eff = s1[0] * s2[0]                  # 4
        w_eff = jnp.zeros((out_nodes, in_size, self._k_eff, self._k_eff), jnp.float32)
        for kh2 in range(k2):
            for kw2 in range(k2):
                contrib = jnp.einsum("oc,cihw->oihw", self.w2[:, :, kh2, kw2], self.w1)
                w_eff = w_eff.at[:, :,
                                 s1[0] * kh2: s1[0] * kh2 + k1,
                                 s1[1] * kw2: s1[1] * kw2 + k1].add(contrib)
        b_eff = self.b2 + jnp.einsum("ochw,c->o", self.w2, self.b1)

        # ---- Pre-packed bf16 matmul operands (built once): rows ordered (kh, kw, ci),
        # K padded to 256, out-channel lanes padded to 128.
        K = self._k_eff * self._k_eff * in_size      # 196 for CI=4
        self._k_real = K
        self._k_pad = _ceil_to(K, 256)               # 256
        wm = jnp.transpose(w_eff, (2, 3, 1, 0)).reshape(K, out_nodes)
        wm = jnp.pad(wm, ((0, self._k_pad - K), (0, 128 - out_nodes)))
        self.w_mat = wm.astype(jnp.bfloat16)
        self.b_row = jnp.pad(b_eff[None, :].astype(jnp.float32),
                             ((0, 0), (0, 128 - out_nodes)))

        # Output spatial size, same formula as the PyTorch module.
        conv_kers = [k1, k2]
        conv_strides = [s1, s2]
        convh, convw = hp.input_rows, hp.input_cols
        for i in range(len(conv_kers)):
            sh, sw = list(conv_strides[i])
            convh = (convh - conv_kers[i] + sh) // sh
            convw = (convw - conv_kers[i] + sw) // sw
        self.out_size = out_nodes * convh * convw
        self._convh, self._convw = convh, convw      # 3, 3

    @functools.partial(jax.jit, static_argnums=0)
    def forward(self, x_nchw):
        B, CI, H, W = x_nchw.shape
        oh_n, ow_n = self._convh, self._convw
        ke, se = self._k_eff, self._s_eff
        K = self._k_real
        m = B * oh_n * ow_n

        # --- im2col of the composed conv, done in the wrapper (XLA) and fused into the
        # pallas_call input via allow_input_fusion.  bf16 cast folded into the layout op.
        xh = jnp.transpose(x_nchw, (0, 2, 3, 1)).astype(jnp.bfloat16)   # NHWC (B,16,16,CI)
        wins = []
        for oh in range(oh_n):
            for ow in range(ow_n):
                wins.append(
                    xh[:, se * oh: se * oh + ke, se * ow: se * ow + ke, :]
                    .reshape(B, 1, K))                                  # (kh, kw, ci) order
        patches = jnp.concatenate(wins, axis=1).reshape(m, K)           # rows b*9+oh*3+ow

        # Row tile size (multiple of 8, <= 256); zero-padded rows just produce bias and are
        # sliced off below.  K zero-padded to 256 to match the packed weights.
        tm = _ceil_to(m, 8) if m <= 256 else 256
        m_pad = _ceil_to(m, tm)
        patches = jnp.pad(patches, ((0, m_pad - m), (0, self._k_pad - K)))

        out = pl.pallas_call(
            _convsub_matmul_kernel,
            out_shape=jax.ShapeDtypeStruct((m_pad, 128), jnp.float32),
            grid=(m_pad // tm,),
            in_specs=[
                pl.BlockSpec((tm, self._k_pad), lambda i: (i, 0)),
                pl.BlockSpec((self._k_pad, 128), lambda i: (0, 0)),   # VMEM-resident weights
                pl.BlockSpec((1, 128), lambda i: (0, 0)),             # VMEM-resident bias
            ],
            out_specs=pl.BlockSpec((tm, 128), lambda i: (i, 0)),
            compiler_params=pltpu.CompilerParams(
                dimension_semantics=("parallel",),        # megacore-shardable over rows
                allow_input_fusion=[True, False, False],  # fuse wrapper im2col into the call
            ),
        )(patches, self.w_mat, self.b_row)

        # rows m = b*9 + oh2*3 + ow2; keep real rows / channel lanes, return NCHW to match
        # the PyTorch module.  TODO(synk): return NHWC and drop this transpose if the
        # downstream consumer can take channels-last.
        y = out[:m, :self.out_nodes].reshape(B, oh_n, ow_n, self.out_nodes)
        return jnp.transpose(y, (0, 3, 1, 2))             # (B, out_nodes, 3, 3)


# ------------------------------- Reference ----------------------------------
def _ref_conv(x_nchw, w, b, stride):
    y = jax.lax.conv_general_dilated(
        x_nchw, w, window_strides=stride, padding="VALID",
        dimension_numbers=("NCHW", "OIHW", "NCHW"))
    return y + b[None, :, None, None]


def _ref_forward(mod, x_nchw):
    y = _ref_conv(x_nchw, mod.w1, mod.b1, mod.hp.conv_sub_1_stride)
    y = _ref_conv(y, mod.w2, mod.b2, mod.hp.conv_sub_2_stride)
    return y


# --------------------------------- Main -------------------------------------
if __name__ == "__main__":
    hp = HParams()
    in_size = 4
    out_nodes = 12

    key = jax.random.PRNGKey(0)
    kx, kp = jax.random.split(key)
    x = jax.random.normal(kx, (2, in_size, hp.input_rows, hp.input_cols), jnp.float32)

    mod = ConvSubSamplingPallas(hp, in_size, out_nodes, kp)

    out = jax.block_until_ready(mod.forward(x))

    expected_shape = (2, out_nodes, 3, 3)  # (16-3+2)//2=7, then (7-3+2)//2=3
    assert out.shape == expected_shape, (out.shape, expected_shape)
    assert out_nodes * 3 * 3 == mod.out_size

    ref = jax.block_until_ready(_ref_forward(mod, x))
    # bf16 patches/weights with f32 accumulation: bounded by the 2e-2 test tolerance.
    np.testing.assert_allclose(np.asarray(out), np.asarray(ref), rtol=2e-2, atol=2e-2)

    print("KERNEL_OK")
</pallas_src>

<mosaic_0001>
module attributes {stable_mosaic.version = 11 : i64} {
  func.func @_convsub_matmul_kernel(%arg0: i32, %arg1: memref<24x256xbf16, #tpu.memory_space<vmem>>, %arg2: memref<256x128xbf16, #tpu.memory_space<vmem>>, %arg3: memref<1x128xf32, #tpu.memory_space<vmem>>, %arg4: memref<24x128xf32, #tpu.memory_space<vmem>>) attributes {dimension_semantics = [#tpu.dimension_semantics<parallel>], iteration_bounds = array<i64: 1>, scalar_prefetch = 0 : i64, scratch_operands = 0 : i64, tpu.core_type = #tpu.core_type<tc>, window_params = [{transform_indices = @transform_0, window_bounds = array<i64: 24, 256>}, {pipeline_mode = #tpu.pipeline_mode<synchronous>, transform_indices = @transform_1, window_bounds = array<i64: 256, 128>}, {pipeline_mode = #tpu.pipeline_mode<synchronous>, transform_indices = @transform_2, window_bounds = array<i64: 1, 128>}, {transform_indices = @transform_3, window_bounds = array<i64: 24, 128>}]} {
    %c0 = arith.constant 0 : index
    %c0_0 = arith.constant 0 : index
    %0 = vector.load %arg1[%c0, %c0_0] : memref<24x256xbf16, #tpu.memory_space<vmem>>, vector<24x256xbf16>
    %c0_1 = arith.constant 0 : index
    %c0_2 = arith.constant 0 : index
    %1 = vector.load %arg2[%c0_1, %c0_2] : memref<256x128xbf16, #tpu.memory_space<vmem>>, vector<256x128xbf16>
    %cst = arith.constant dense<0.000000e+00> : vector<24x128xf32>
    %2 = tpu.matmul %0, %1, %cst {dimension_numbers = #tpu.dot_dimension_numbers<[1], [0], [0], [1], [0, 0, 1, 1], [], []>} : vector<24x256xbf16>, vector<256x128xbf16>, vector<24x128xf32> -> vector<24x128xf32>
    %c0_3 = arith.constant 0 : index
    %c0_4 = arith.constant 0 : index
    %3 = vector.load %arg3[%c0_3, %c0_4] : memref<1x128xf32, #tpu.memory_space<vmem>>, vector<1x128xf32>
    %4 = vector.broadcast %3 : vector<1x128xf32> to vector<24x128xf32>
    %5 = arith.addf %2, %4 : vector<24x128xf32>
    %c0_5 = arith.constant 0 : index
    %c0_6 = arith.constant 0 : index
    %6 = vector.load %arg4[%c0_5, %c0_6] : memref<24x128xf32, #tpu.memory_space<vmem>>, vector<24x128xf32>
    tpu.vector_store %arg4[%c0_5, %c0_6], %5 {strides = array<i32>} : memref<24x128xf32, #tpu.memory_space<vmem>>, vector<24x128xf32>,
    return
  }
  func.func @transform_0(%arg0: i32) -> (i32, i32) {
    %c0_i32 = arith.constant 0 : i32
    %c0_i32_0 = arith.constant 0 : i32
    return %arg0, %c0_i32 : i32, i32
  }
  func.func @transform_1(%arg0: i32) -> (i32, i32) {
    %c0_i32 = arith.constant 0 : i32
    %c0_i32_0 = arith.constant 0 : i32
    %c0_i32_1 = arith.constant 0 : i32
    return %c0_i32, %c0_i32_0 : i32, i32
  }
  func.func @transform_2(%arg0: i32) -> (i32, i32) {
    %c0_i32 = arith.constant 0 : i32
    %c0_i32_0 = arith.constant 0 : i32
    %c0_i32_1 = arith.constant 0 : i32
    return %c0_i32, %c0_i32_0 : i32, i32
  }
  func.func @transform_3(%arg0: i32) -> (i32, i32) {
    %c0_i32 = arith.constant 0 : i32
    %c0_i32_0 = arith.constant 0 : i32
    return %arg0, %c0_i32 : i32, i32
  }
}

</mosaic_0001>

<bundles_post_ra>
// kernel: forward.2
= control target key start
LH: loop header
LB: loop body
LE: loop exit
PB: predicated region body
PF: predicated region fallthrough
CT: control target
= control target key end

     0   :  { %s425_s0 = inlined_call_operand.vmem [shape: bf16[256,128], index: 0, kind: input, shape index: {}]   ;;  %s426_s1 = inlined_call_operand.vmem [shape: f32[1,128], index: 1, kind: input, shape index: {}]   ;;  %s427_s2 = inlined_call_operand.vmem [shape: bf16[18,196], index: 2, kind: input, shape index: {}]   ;;  %s428_s3 = inlined_call_operand.<no memory space> [shape: bf16[], index: 3, kind: input, shape index: {}]   ;;  %s429_s4 = inlined_call_operand.vmem [shape: f32[24,128], index: 4, kind: output, shape index: {}]  }
   0x1   :  { %v9_v0 = vstv %s428_s3 }
   0x2   :  { %v10_v1 = vunpack.i.l.bf16 %v9_v0 }
   0x3   :  { %v174_v2 = vld [vmem:[%s425_s0 + $0x40] sm:$0xff]  ;;  %v175_v4 = vld [vmem:[%s425_s0 + $0x48] sm:$0xff]  ;;  %v54_v5 = vlaneseq  ;;  %v176_v9 = vld [vmem:[%s425_s0 + $0x50] sm:$0xff]  ;;  %v321_v24 = vmov 0.0  }
   0x4   :  { %v166_v3 = vld [vmem:[%s425_s0] sm:$0xff]  ;;  %271 = vmatprep.subr.bf16.mxu0 %v174_v2  ;;  %299 = vmatprep.subr.bf16.mxu1 %v174_v2  ;;  %v167_v8 = vld [vmem:[%s425_s0 + $0x8] sm:$0xff]  ;;  %v168_v18 = vld [vmem:[%s425_s0 + $0x10] sm:$0xff] }
   0x5   :  { %272 = vmatpush3.bf16.msra.mxu0 %v166_v3  ;;  %307 = vmatpush3.bf16.msra.mxu1 %v166_v3  ;;  %v55_v6 = vand.u32 127, %v54_v5  ;;  %v122_v7 = vshrl.u32 %v54_v5, 7  ;;  %v20_v12 = vld [vmem:[%s427_s2] sm:$0xf]  ;;  %v261_v13 = vld [vmem:[%s427_s2 + $0x4] ss:$16 sps:$4 sm:$0xff]  }
   0x6   :  { %273 = vmatprep.subr.bf16.mxu0 %v175_v4  ;;  %300 = vmatprep.subr.bf16.mxu1 %v175_v4  ;;  %35 = vst [vmem:[#allocation7] sm:$0xf] %v20_v12  ;;  %v47_v14 = vunpack.c.l.bf16 %v261_v13  ;;  %v262_v15 = vld [vmem:[%s427_s2 + $0x8] sm:$0xf]  ;;  %v263_v16 = vld [vmem:[%s427_s2 + $0xc] sm:$0xff]   ;;  %v146_v17 = vunpack.c.h.bf16 %v261_v13  ;;  %v177_v21 = vld [vmem:[%s425_s0 + $0x58] sm:$0xff] }
   0x7   :  { %v56_v10 = vadd.s32 128, %v55_v6  ;;  %v123_v11 = vadd.s32 16, %v122_v7  ;;  %80 = vst [vmem:[#allocation7 + $0x8] sm:$0xf] %v262_v15  ;;  %v92_v19 = vunpack.c.l.bf16 %v263_v16  ;;  %v119_v20 = vunpack.c.h.bf16 %v263_v16  ;;  %v169_v32 = vld [vmem:[%s425_s0 + $0x18] sm:$0xff]  ;;  %v178_v33 = vld [vmem:[%s425_s0 + $0x60] sm:$0xff] }
   0x8   :  { %v170_v34 = vld [vmem:[%s425_s0 + $0x20] sm:$0xff]  ;;  %v179_v35 = vld [vmem:[%s425_s0 + $0x68] sm:$0xff]  ;;  %v180_v38 = vld [vmem:[%s425_s0 + $0x70] sm:$0xff] }
   0x9   :  { %274 = vmatpush3.bf16.msra.mxu0 %v167_v8  ;;  %308 = vmatpush3.bf16.msra.mxu1 %v167_v8  ;;  %vm57_vm0 = vcmp.lt.s32.totalorder %v56_v10, 196  ;;  %vm124_vm1 = vcmp.lt.s32.totalorder %v123_v11, 18  ;;  %v171_v36 = vld [vmem:[%s425_s0 + $0x28] sm:$0xff]  ;;  %v172_v41 = vld [vmem:[%s425_s0 + $0x30] sm:$0xff]  ;;  %v181_v42 = vld [vmem:[%s425_s0 + $0x78] sm:$0xff] }
   0xa   :  { %275 = vmatprep.subr.bf16.mxu0 %v176_v9  ;;  %301 = vmatprep.subr.bf16.mxu1 %v176_v9  ;;  %v58_v22 = vsel %vm57_vm0, %v47_v14, %v10_v1  ;;  %v152_v23 = vsel %vm124_vm1, %v146_v17, %v10_v1  ;;  %v103_v26 = vsel %vm57_vm0, %v92_v19, %v10_v1  ;;  %v173_v43 = vld [vmem:[%s425_s0 + $0x38] sm:$0xff]  ;;  %v266_v48 = vld [vmem:[%s426_s1] ss:$0 sm:$0xff] }
   0xb   :  { %v60_v25 = vpack.c.bf16 %v321_v24, %v58_v22  ;;  %v125_v27 = vsel %vm124_vm1, %v119_v20, %v10_v1  ;;  %v157_v28 = vsel %vm57_vm0, %v152_v23, %v10_v1  ;;  %v105_v29 = vpack.c.bf16 %v321_v24, %v103_v26 }
   0xc   :  { %v132_v30 = vpack.c.bf16 %v321_v24, %v125_v27  ;;  %v159_v31 = vpack.c.bf16 %v321_v24, %v157_v28 }
   0xd   :  { %276 = vmatpush3.bf16.msra.mxu0 %v168_v18  ;;  %309 = vmatpush3.bf16.msra.mxu1 %v168_v18  ;;  %62 = vst [vmem:[#allocation7 + $0x4] sm:$0xf] %v60_v25  ;;  %107 = vst [vmem:[#allocation7 + $0xc] sm:$0xf] %v105_v29 }
   0xe   :  { %277 = vmatprep.subr.bf16.mxu0 %v177_v21  ;;  %302 = vmatprep.subr.bf16.mxu1 %v177_v21  ;;  %134 = vst [vmem:[#allocation7 + $0x10] sm:$0xf] %v132_v30  ;;  %161 = vst [vmem:[#allocation7 + $0x14] sm:$0xf] %v159_v31  ;;  %v316_v44 = vld [vmem:[#allocation7] ss:$8 sps:$4 sm:$0xff]  }
  0x11   :  { %278 = vmatpush3.bf16.msra.mxu0 %v169_v32  ;;  %310 = vmatpush3.bf16.msra.mxu1 %v169_v32 }
  0x12   :  { %279 = vmatprep.subr.bf16.mxu0 %v178_v33  ;;  %303 = vmatprep.subr.bf16.mxu1 %v178_v33 }
  0x14   :  { %v318_v37 = vld [vmem:[#allocation7 + $0x4] ss:$8 sps:$4 sm:$0xff]  }
  0x15   :  { %280 = vmatpush3.bf16.msra.mxu0 %v170_v34  ;;  %311 = vmatpush3.bf16.msra.mxu1 %v170_v34  ;;  %v165_v39 = vld [vmem:[#allocation7 + $0x10] sm:$0xff] }
  0x16   :  { %281 = vmatprep.subr.bf16.mxu0 %v179_v35  ;;  %304 = vmatprep.subr.bf16.mxu1 %v179_v35  ;;  %v270_v40 = vcombine.high %v165_v39, %v165_v39  ;;  %v269_v45 = vcombine.low %v165_v39, %v165_v39 }
  0x17   :  { %238 = vmatprep.mubr.bf16.mxu0 %v318_v37 }
  0x18   :  { %246 = vmatprep.mubr.bf16.mxu1 %v270_v40 }
  0x19   :  { %282 = vmatpush3.bf16.msra.mxu0 %v171_v36  ;;  %312 = vmatpush3.bf16.msra.mxu1 %v171_v36 }
  0x1a   :  { %283 = vmatprep.subr.bf16.mxu0 %v180_v38  ;;  %305 = vmatprep.subr.bf16.mxu1 %v180_v38 }
  0x1d   :  { %284 = vmatpush3.bf16.msra.mxu0 %v172_v41  ;;  %313 = vmatpush3.bf16.msra.mxu1 %v172_v41 }
  0x1e   :  { %285 = vmatprep.subr.bf16.mxu0 %v181_v42  ;;  %306 = vmatprep.subr.bf16.mxu1 %v181_v42 }
  0x21   :  { %286 = vmatpush3.bf16.msra.mxu0 %v173_v43  ;;  %314 = vmatpush3.bf16.msra.mxu1 %v173_v43 }
  0x24   :  { %239 = vmatmul.mubr.bf16.vlgmr.msra.gmra.mrb[0].mxu0 %v316_v44  ;;  %247 = vmatmul.mubr.bf16.vlgmr.msra.gmra.mrb[0].mxu1 %v269_v45 }
  0xf7   :  { %v287_v46 = vpop.f32.mrb[0].mxu0  ;;  %v293_v47 = vpop.f32.mrb[0].mxu1 }
  0xf8   :  { %v288_v49 = vpop.f32.mrb[1].mxu0  ;;  %v294_v50 = vpop.f32.mrb[1].mxu1 }
  0xf9   :  { %v289_v51 = vadd.f32 %v288_v49, %v287_v46  ;;  %v295_v52 = vadd.f32 %v294_v50, %v293_v47  ;;  %v290_v53 = vpop.f32.mrb[2].mxu0  ;;  %v296_v54 = vpop.f32.mrb[2].mxu1 }
  0xfa   :  { %v291_v55 = vpop.f32.mrb[3].mxu0  ;;  %v297_v56 = vpop.f32.mrb[3].mxu1 }
  0xfb   :  { %v241_v57 = vadd.f32 %v289_v51, %v266_v48  ;;  %v249_v58 = vadd.f32 %v295_v52, %v266_v48  ;;  %v292_v59 = vadd.f32 %v291_v55, %v290_v53 }
  0xfd   :  { %254 = vst [vmem:[%s429_s4] sm:$0xff] %v241_v57  ;;  %256 = vst [vmem:[%s429_s4 + $0x10] sm:$0xff] %v249_v58  ;;  %v244_v60 = vadd.f32 %v292_v59, %v266_v48 }
  0xff   :  { %255 = vst [vmem:[%s429_s4 + $0x8] sm:$0xff] %v244_v60 }

</bundles_post_ra>
